<compile_context>
chip_gen: v6e
topology: v6e:2x2x1
jax: 0.10.0
libtpu: 0.0.40
codegen_flags: <defaults>
</compile_context>

<pallas_src>
import jax
import jax.numpy as jnp
from jax.experimental import pallas as pl
from jax.experimental.pallas import tpu as pltpu

_LANE = 128
_OUT_LANES = 8


def _round_up(x, m):
    return ((x + m - 1) // m) * m


def _actor_critic_kernel(x_ref, w1_ref, b1_ref, w2_ref, b2_ref, w3_ref, b3_ref,
                         wc3_ref, inv_var_ref, const_ref, out_ref):
    f32 = jnp.float32
    cdt = w1_ref.dtype                                  # MXU operand dtype
    x = x_ref[...]                                      # (TB, IN) merged state|action

    # ---- fused layer 1 (actor lanes [0:H), critic lanes [H:2H)) --------------
    h = jnp.tanh(jnp.dot(x, w1_ref[...], preferred_element_type=f32)
                 + b1_ref[...])                         # (TB, HID) f32

    # ---- fused block-diagonal layer 2 (one matmul for both branches) ---------
    h = jnp.tanh(jnp.dot(h.astype(cdt), w2_ref[...], preferred_element_type=f32)
                 + b2_ref[...])                         # (TB, HID) f32

    # ---- critic head (N=1): VPU multiply + XLU reduce; wc3 is zero on actor /
    #      pad lanes, so no slicing is needed (all f32 -> v5e-safe) ------------
    value = jnp.sum(h * wc3_ref[...], axis=1, keepdims=True) + const_ref[1]

    # ---- actor layer 3: output columns land on the ACTION lanes of the input
    #      slab, so the diff below lines up without any lane shifting ----------
    mean = jnp.tanh(jnp.dot(h.astype(cdt), w3_ref[...], preferred_element_type=f32)
                    + b3_ref[...])                      # (TB, IN) f32

    # ---- diagonal MVN log_prob: inv_var is non-zero only on action lanes -----
    diff = x.astype(f32) - mean
    maha = jnp.sum(diff * diff * inv_var_ref[...], axis=1, keepdims=True)
    logp = -0.5 * maha + const_ref[0]

    # ---- tiny packed output: col0 = logp, col1 = value -----------------------
    col = jax.lax.broadcasted_iota(jnp.int32, out_ref.shape, 1)
    out_ref[...] = jnp.where(col == 0, logp, jnp.where(col == 1, value, 0.0))


def actor_critic_evaluate(state, action, params, action_var, *,
                          compute_dtype=jnp.bfloat16, tile_b=512):
    """Pallas implementation of ActorCritic.evaluate(state, action)."""
    f32 = jnp.float32
    B, state_dim = state.shape
    action_dim = action.shape[1]
    n_latent = params["actor_b1"].shape[0]
    H, sd, ad = n_latent, state_dim, action_dim

    in_pad = _round_up(sd + ad, _LANE)          # merged state|action slab width
    hid_pad = _round_up(2 * H, _LANE)           # packed actor|critic hidden width

    # Batch tile: large tiles for HBM roofline; >=2 grid steps when possible so
    # both v7x TensorCores get work; bf16 rows round to 16 (native (16,128) tile).
    row_mult = 16 if jnp.dtype(compute_dtype).itemsize < 4 else 8
    tile_b = _round_up(max(int(tile_b), row_mult), row_mult)
    if B <= row_mult:
        tb = row_mult
    else:
        tb = min(tile_b, _round_up(-(-B // 2), row_mult))
    b_pad = _round_up(B, tb)

    # ---- packed parameters (PyTorch (out,in) -> (in,out), zero-padded) -------
    w1 = jnp.zeros((in_pad, hid_pad), f32)
    w1 = w1.at[:sd, :H].set(jnp.asarray(params["actor_w1"], f32).T)
    w1 = w1.at[:sd, H:2 * H].set(jnp.asarray(params["critic_w1"], f32).T)
    b1 = jnp.zeros((1, hid_pad), f32)
    b1 = b1.at[0, :H].set(jnp.asarray(params["actor_b1"], f32))
    b1 = b1.at[0, H:2 * H].set(jnp.asarray(params["critic_b1"], f32))

    w2 = jnp.zeros((hid_pad, hid_pad), f32)     # block-diagonal: one fused matmul
    w2 = w2.at[:H, :H].set(jnp.asarray(params["actor_w2"], f32).T)
    w2 = w2.at[H:2 * H, H:2 * H].set(jnp.asarray(params["critic_w2"], f32).T)
    b2 = jnp.zeros((1, hid_pad), f32)
    b2 = b2.at[0, :H].set(jnp.asarray(params["actor_b2"], f32))
    b2 = b2.at[0, H:2 * H].set(jnp.asarray(params["critic_b2"], f32))

    # Actor layer 3: outputs placed on the action lanes; critic-hidden rows = 0.
    w3 = jnp.zeros((hid_pad, in_pad), f32)
    w3 = w3.at[:H, sd:sd + ad].set(jnp.asarray(params["actor_w3"], f32).T)
    b3 = jnp.zeros((1, in_pad), f32)
    b3 = b3.at[0, sd:sd + ad].set(jnp.asarray(params["actor_b3"], f32))

    # Critic head (N=1) as a zero-padded row over the critic hidden lanes.
    wc3 = jnp.zeros((1, hid_pad), f32)
    wc3 = wc3.at[0, H:2 * H].set(jnp.asarray(params["critic_w3"], f32).reshape(-1))
    bc3 = jnp.asarray(params["critic_b3"], f32).reshape(())

    # Hoisted, input-independent constants; padded inv_var lanes stay 0 so only
    # the real action lanes enter the mahalanobis reduction.
    var = jnp.asarray(action_var, f32)
    inv_var = jnp.zeros((1, in_pad), f32).at[0, sd:sd + ad].set(1.0 / var)
    log2pi = jnp.log(jnp.asarray(2.0 * jnp.pi, f32))
    logdet = jnp.sum(jnp.log(var))
    logp_const = -0.5 * (ad * log2pi + logdet)
    ent_const = 0.5 * ad * (1.0 + log2pi) + 0.5 * logdet
    consts = jnp.stack([logp_const, bc3])       # flat 1-D (2,) SMEM scalars

    # Merged state|action input slab -- the only per-row streamed input.
    x = jnp.zeros((b_pad, in_pad), f32)
    x = x.at[:B, :sd].set(jnp.asarray(state, f32))
    x = x.at[:B, sd:sd + ad].set(jnp.asarray(action, f32))
    x = x.astype(compute_dtype)

    w1c, w2c, w3c = (w.astype(compute_dtype) for w in (w1, w2, w3))
    vmem_args = [w1c, b1, w2c, b2, w3c, b3, wc3, inv_var]
    args = [x] + vmem_args + [consts]

    row_spec = lambda shape: pl.BlockSpec(shape, lambda i: (i, 0))
    const_spec = lambda shape: pl.BlockSpec(shape, lambda i: (0, 0))
    in_specs = ([row_spec((tb, in_pad))]                       # streamed slab
                + [const_spec(tuple(a.shape)) for a in vmem_args]  # resident weights
                + [pl.BlockSpec(memory_space=pltpu.MemorySpace.SMEM)])
    out_specs = row_spec((tb, _OUT_LANES))

    # VMEM budget from real block sizes (double-buffered) with headroom; stays
    # far under v7x's 64 MiB physical VMEM for any reasonable n_latent.
    streamed = tb * in_pad * jnp.dtype(compute_dtype).itemsize + tb * _OUT_LANES * 4
    resident = sum(int(a.size) * a.dtype.itemsize for a in vmem_args)
    vmem_limit = min(max(4 * (streamed + resident) + (2 << 20), 8 << 20), 48 << 20)

    flops = (2 * b_pad * (in_pad * hid_pad + hid_pad * hid_pad + hid_pad * in_pad
                          + hid_pad) + 3 * b_pad * in_pad)
    transcendentals = b_pad * (2 * hid_pad + in_pad)
    bytes_accessed = (sum(int(a.size) * a.dtype.itemsize for a in args)
                      + b_pad * _OUT_LANES * 4)

    out = pl.pallas_call(
        _actor_critic_kernel,
        grid=(b_pad // tb,),
        out_shape=jax.ShapeDtypeStruct((b_pad, _OUT_LANES), f32),
        in_specs=in_specs,
        out_specs=out_specs,
        compiler_params=pltpu.CompilerParams(
            dimension_semantics=("parallel",),
            vmem_limit_bytes=int(vmem_limit)),
        cost_estimate=pl.CostEstimate(flops=int(flops),
                                      transcendentals=int(transcendentals),
                                      bytes_accessed=int(bytes_accessed)),
    )(*args)

    logp = out[:B, 0]
    value = out[:B, 1]
    entropy = jnp.full((B,), ent_const, f32)    # input-independent constant
    return logp, value, entropy


def init_params(key, state_dim, action_dim, n_latent_var):
    """Deterministic PyTorch-Linear-style init (uniform +/- 1/sqrt(fan_in))."""
    params = {}
    dims_actor = [(state_dim, n_latent_var), (n_latent_var, n_latent_var),
                  (n_latent_var, action_dim)]
    dims_critic = [(state_dim, n_latent_var), (n_latent_var, n_latent_var),
                   (n_latent_var, 1)]
    for branch, dims in (("actor", dims_actor), ("critic", dims_critic)):
        for i, (fan_in, fan_out) in enumerate(dims, start=1):
            key, kw, kb = jax.random.split(key, 3)
            bound = 1.0 / jnp.sqrt(fan_in)
            params[f"{branch}_w{i}"] = jax.random.uniform(
                kw, (fan_out, fan_in), jnp.float32, -bound, bound)
            params[f"{branch}_b{i}"] = jax.random.uniform(
                kb, (fan_out,), jnp.float32, -bound, bound)
    return params


def reference_evaluate(state, action, params, action_var):
    """Pure-JAX reference for correctness checking."""
    def mlp(x, branch, final_tanh):
        for i in (1, 2):
            x = jnp.tanh(x @ params[f"{branch}_w{i}"].T + params[f"{branch}_b{i}"])
        x = x @ params[f"{branch}_w3"].T + params[f"{branch}_b3"]
        return jnp.tanh(x) if final_tanh else x

    mean = mlp(state, "actor", True)
    value = mlp(state, "critic", False)[:, 0]
    d = action.shape[1]
    log2pi = jnp.log(2.0 * jnp.pi)
    diff = action - mean
    maha = jnp.sum(diff * diff / action_var[None, :], axis=1)
    logdet = jnp.sum(jnp.log(action_var))
    logp = -0.5 * (maha + d * log2pi + logdet)
    ent = jnp.full((state.shape[0],), 0.5 * d * (1.0 + log2pi) + 0.5 * logdet)
    return logp, value, ent


if __name__ == "__main__":
    # Small shapes consistent with the module's forward.
    B, state_dim, action_dim, n_latent_var = 8, 16, 4, 32
    action_std = 0.5

    key = jax.random.PRNGKey(0)
    kp, ks, ka = jax.random.split(key, 3)
    params = init_params(kp, state_dim, action_dim, n_latent_var)
    state = jax.random.normal(ks, (B, state_dim), jnp.float32)
    action = jax.random.normal(ka, (B, action_dim), jnp.float32)
    action_var = jnp.full((action_dim,), action_std * action_std, jnp.float32)

    logp_r, value_r, ent_r = reference_evaluate(state, action, params, action_var)

    # --- f32 operand path (exactness check) ---
    logp, value, ent = actor_critic_evaluate(state, action, params, action_var,
                                             compute_dtype=jnp.float32)
    jax.block_until_ready((logp, value, ent))
    assert jnp.allclose(logp, logp_r, atol=2e-3, rtol=1e-3)
    assert jnp.allclose(value, value_r, atol=1e-2, rtol=1e-3)
    assert jnp.allclose(ent, ent_r, atol=1e-5, rtol=1e-5)

    # --- default bf16-operand path (f32 accumulation + f32 tanh/log-prob math);
    #     tolerances reflect bf16 operand rounding only.
    logp_b, value_b, ent_b = actor_critic_evaluate(state, action, params, action_var)
    jax.block_until_ready((logp_b, value_b, ent_b))
    assert jnp.allclose(logp_b, logp_r, atol=6e-1, rtol=5e-2)
    assert jnp.allclose(value_b, value_r, atol=6e-2, rtol=5e-2)
    assert jnp.allclose(ent_b, ent_r, atol=1e-5, rtol=1e-5)

    print("KERNEL_OK")
</pallas_src>

<mosaic_0001>
module attributes {stable_mosaic.version = 11 : i64} {
  func.func @_actor_critic_kernel(%arg0: i32, %arg1: memref<8x128xf32, #tpu.memory_space<vmem>>, %arg2: memref<128x128xf32, #tpu.memory_space<vmem>>, %arg3: memref<1x128xf32, #tpu.memory_space<vmem>>, %arg4: memref<128x128xf32, #tpu.memory_space<vmem>>, %arg5: memref<1x128xf32, #tpu.memory_space<vmem>>, %arg6: memref<128x128xf32, #tpu.memory_space<vmem>>, %arg7: memref<1x128xf32, #tpu.memory_space<vmem>>, %arg8: memref<1x128xf32, #tpu.memory_space<vmem>>, %arg9: memref<1x128xf32, #tpu.memory_space<vmem>>, %arg10: memref<2xf32, #tpu.memory_space<smem>>, %arg11: memref<8x8xf32, #tpu.memory_space<vmem>>) attributes {dimension_semantics = [#tpu.dimension_semantics<parallel>], iteration_bounds = array<i64: 1>, scalar_prefetch = 0 : i64, scratch_operands = 0 : i64, tpu.core_type = #tpu.core_type<tc>, window_params = [{transform_indices = @transform_0, window_bounds = array<i64: 8, 128>}, {pipeline_mode = #tpu.pipeline_mode<synchronous>, transform_indices = @transform_1, window_bounds = array<i64: 128, 128>}, {pipeline_mode = #tpu.pipeline_mode<synchronous>, transform_indices = @transform_2, window_bounds = array<i64: 1, 128>}, {pipeline_mode = #tpu.pipeline_mode<synchronous>, transform_indices = @transform_3, window_bounds = array<i64: 128, 128>}, {pipeline_mode = #tpu.pipeline_mode<synchronous>, transform_indices = @transform_4, window_bounds = array<i64: 1, 128>}, {pipeline_mode = #tpu.pipeline_mode<synchronous>, transform_indices = @transform_5, window_bounds = array<i64: 128, 128>}, {pipeline_mode = #tpu.pipeline_mode<synchronous>, transform_indices = @transform_6, window_bounds = array<i64: 1, 128>}, {pipeline_mode = #tpu.pipeline_mode<synchronous>, transform_indices = @transform_7, window_bounds = array<i64: 1, 128>}, {pipeline_mode = #tpu.pipeline_mode<synchronous>, transform_indices = @transform_8, window_bounds = array<i64: 1, 128>}, {transform_indices = @transform_9, window_bounds = array<i64: 2>}, {transform_indices = @transform_10, window_bounds = array<i64: 8, 8>}]} {
    %c0 = arith.constant 0 : index
    %c0_0 = arith.constant 0 : index
    %0 = vector.load %arg1[%c0, %c0_0] : memref<8x128xf32, #tpu.memory_space<vmem>>, vector<8x128xf32>
    %c0_1 = arith.constant 0 : index
    %c0_2 = arith.constant 0 : index
    %1 = vector.load %arg2[%c0_1, %c0_2] : memref<128x128xf32, #tpu.memory_space<vmem>>, vector<128x128xf32>
    %cst = arith.constant dense<0.000000e+00> : vector<8x128xf32>
    %2 = tpu.matmul %0, %1, %cst {dimension_numbers = #tpu.dot_dimension_numbers<[1], [0], [0], [1], [0, 0, 1, 1], [], []>} : vector<8x128xf32>, vector<128x128xf32>, vector<8x128xf32> -> vector<8x128xf32>
    %c0_3 = arith.constant 0 : index
    %c0_4 = arith.constant 0 : index
    %3 = vector.load %arg3[%c0_3, %c0_4] : memref<1x128xf32, #tpu.memory_space<vmem>>, vector<1x128xf32>
    %4 = vector.broadcast %3 : vector<1x128xf32> to vector<8x128xf32>
    %5 = arith.addf %2, %4 : vector<8x128xf32>
    %6 = math.tanh %5 : vector<8x128xf32>
    %c0_5 = arith.constant 0 : index
    %c0_6 = arith.constant 0 : index
    %7 = vector.load %arg4[%c0_5, %c0_6] : memref<128x128xf32, #tpu.memory_space<vmem>>, vector<128x128xf32>
    %cst_7 = arith.constant dense<0.000000e+00> : vector<8x128xf32>
    %8 = tpu.matmul %6, %7, %cst_7 {dimension_numbers = #tpu.dot_dimension_numbers<[1], [0], [0], [1], [0, 0, 1, 1], [], []>} : vector<8x128xf32>, vector<128x128xf32>, vector<8x128xf32> -> vector<8x128xf32>
    %c0_8 = arith.constant 0 : index
    %c0_9 = arith.constant 0 : index
    %9 = vector.load %arg5[%c0_8, %c0_9] : memref<1x128xf32, #tpu.memory_space<vmem>>, vector<1x128xf32>
    %10 = vector.broadcast %9 : vector<1x128xf32> to vector<8x128xf32>
    %11 = arith.addf %8, %10 : vector<8x128xf32>
    %12 = math.tanh %11 : vector<8x128xf32>
    %c0_10 = arith.constant 0 : index
    %c0_11 = arith.constant 0 : index
    %13 = vector.load %arg8[%c0_10, %c0_11] : memref<1x128xf32, #tpu.memory_space<vmem>>, vector<1x128xf32>
    %14 = vector.broadcast %13 : vector<1x128xf32> to vector<8x128xf32>
    %15 = arith.mulf %12, %14 : vector<8x128xf32>
    %cst_12 = arith.constant dense<0.000000e+00> : vector<8xf32>
    %16 = vector.multi_reduction <add>, %15, %cst_12 [1] : vector<8x128xf32> to vector<8xf32>
    %17 = vector.shape_cast %16 : vector<8xf32> to vector<8x1xf32>
    %c1 = arith.constant 1 : index
    %18 = memref.load %arg10[%c1] : memref<2xf32, #tpu.memory_space<smem>>
    %19 = vector.broadcast %18 : f32 to vector<8x1xf32>
    %20 = arith.addf %17, %19 : vector<8x1xf32>
    %c0_13 = arith.constant 0 : index
    %c0_14 = arith.constant 0 : index
    %21 = vector.load %arg6[%c0_13, %c0_14] : memref<128x128xf32, #tpu.memory_space<vmem>>, vector<128x128xf32>
    %cst_15 = arith.constant dense<0.000000e+00> : vector<8x128xf32>
    %22 = tpu.matmul %12, %21, %cst_15 {dimension_numbers = #tpu.dot_dimension_numbers<[1], [0], [0], [1], [0, 0, 1, 1], [], []>} : vector<8x128xf32>, vector<128x128xf32>, vector<8x128xf32> -> vector<8x128xf32>
    %c0_16 = arith.constant 0 : index
    %c0_17 = arith.constant 0 : index
    %23 = vector.load %arg7[%c0_16, %c0_17] : memref<1x128xf32, #tpu.memory_space<vmem>>, vector<1x128xf32>
    %24 = vector.broadcast %23 : vector<1x128xf32> to vector<8x128xf32>
    %25 = arith.addf %22, %24 : vector<8x128xf32>
    %26 = math.tanh %25 : vector<8x128xf32>
    %27 = arith.subf %0, %26 : vector<8x128xf32>
    %28 = arith.mulf %27, %27 : vector<8x128xf32>
    %c0_18 = arith.constant 0 : index
    %c0_19 = arith.constant 0 : index
    %29 = vector.load %arg9[%c0_18, %c0_19] : memref<1x128xf32, #tpu.memory_space<vmem>>, vector<1x128xf32>
    %30 = vector.broadcast %29 : vector<1x128xf32> to vector<8x128xf32>
    %31 = arith.mulf %28, %30 : vector<8x128xf32>
    %cst_20 = arith.constant dense<0.000000e+00> : vector<8xf32>
    %32 = vector.multi_reduction <add>, %31, %cst_20 [1] : vector<8x128xf32> to vector<8xf32>
    %33 = vector.shape_cast %32 : vector<8xf32> to vector<8x1xf32>
    %cst_21 = arith.constant -5.000000e-01 : f32
    %34 = vector.broadcast %cst_21 : f32 to vector<8x1xf32>
    %35 = arith.mulf %34, %33 : vector<8x1xf32>
    %c0_22 = arith.constant 0 : index
    %36 = memref.load %arg10[%c0_22] : memref<2xf32, #tpu.memory_space<smem>>
    %37 = vector.broadcast %36 : f32 to vector<8x1xf32>
    %38 = arith.addf %35, %37 : vector<8x1xf32>
    %39 = tpu.iota {dimensions = array<i32: 1>} : vector<8x8xi32>
    %c0_i32 = arith.constant 0 : i32
    %40 = vector.broadcast %c0_i32 : i32 to vector<8x8xi32>
    %41 = arith.cmpi eq, %39, %40 : vector<8x8xi32>
    %c1_i32 = arith.constant 1 : i32
    %42 = vector.broadcast %c1_i32 : i32 to vector<8x8xi32>
    %43 = arith.cmpi eq, %39, %42 : vector<8x8xi32>
    %cst_23 = arith.constant 0.000000e+00 : f32
    %44 = vector.shape_cast %20 : vector<8x1xf32> to vector<8x1xf32>
    %45 = vector.broadcast %44 : vector<8x1xf32> to vector<8x8xf32>
    %46 = vector.broadcast %cst_23 : f32 to vector<8x8xf32>
    %47 = arith.select %43, %45, %46 : vector<8x8xi1>, vector<8x8xf32>
    %48 = vector.shape_cast %38 : vector<8x1xf32> to vector<8x1xf32>
    %49 = vector.broadcast %48 : vector<8x1xf32> to vector<8x8xf32>
    %50 = arith.select %41, %49, %47 : vector<8x8xi1>, vector<8x8xf32>
    %c0_24 = arith.constant 0 : index
    %c0_25 = arith.constant 0 : index
    %51 = vector.load %arg11[%c0_24, %c0_25] : memref<8x8xf32, #tpu.memory_space<vmem>>, vector<8x8xf32>
    tpu.vector_store %arg11[%c0_24, %c0_25], %50 {strides = array<i32>} : memref<8x8xf32, #tpu.memory_space<vmem>>, vector<8x8xf32>,
    return
  }
  func.func @transform_0(%arg0: i32) -> (i32, i32) {
    %c0_i32 = arith.constant 0 : i32
    %c0_i32_0 = arith.constant 0 : i32
    return %arg0, %c0_i32 : i32, i32
  }
  func.func @transform_1(%arg0: i32) -> (i32, i32) {
    %c0_i32 = arith.constant 0 : i32
    %c0_i32_0 = arith.constant 0 : i32
    %c0_i32_1 = arith.constant 0 : i32
    return %c0_i32, %c0_i32_0 : i32, i32
  }
  func.func @transform_2(%arg0: i32) -> (i32, i32) {
    %c0_i32 = arith.constant 0 : i32
    %c0_i32_0 = arith.constant 0 : i32
    %c0_i32_1 = arith.constant 0 : i32
    return %c0_i32, %c0_i32_0 : i32, i32
  }
  func.func @transform_3(%arg0: i32) -> (i32, i32) {
    %c0_i32 = arith.constant 0 : i32
    %c0_i32_0 = arith.constant 0 : i32
    %c0_i32_1 = arith.constant 0 : i32
    return %c0_i32, %c0_i32_0 : i32, i32
  }
  func.func @transform_4(%arg0: i32) -> (i32, i32) {
    %c0_i32 = arith.constant 0 : i32
    %c0_i32_0 = arith.constant 0 : i32
    %c0_i32_1 = arith.constant 0 : i32
    return %c0_i32, %c0_i32_0 : i32, i32
  }
  func.func @transform_5(%arg0: i32) -> (i32, i32) {
    %c0_i32 = arith.constant 0 : i32
    %c0_i32_0 = arith.constant 0 : i32
    %c0_i32_1 = arith.constant 0 : i32
    return %c0_i32, %c0_i32_0 : i32, i32
  }
  func.func @transform_6(%arg0: i32) -> (i32, i32) {
    %c0_i32 = arith.constant 0 : i32
    %c0_i32_0 = arith.constant 0 : i32
    %c0_i32_1 = arith.constant 0 : i32
    return %c0_i32, %c0_i32_0 : i32, i32
  }
  func.func @transform_7(%arg0: i32) -> (i32, i32) {
    %c0_i32 = arith.constant 0 : i32
    %c0_i32_0 = arith.constant 0 : i32
    %c0_i32_1 = arith.constant 0 : i32
    return %c0_i32, %c0_i32_0 : i32, i32
  }
  func.func @transform_8(%arg0: i32) -> (i32, i32) {
    %c0_i32 = arith.constant 0 : i32
    %c0_i32_0 = arith.constant 0 : i32
    %c0_i32_1 = arith.constant 0 : i32
    return %c0_i32, %c0_i32_0 : i32, i32
  }
  func.func @transform_9(%arg0: i32) -> i32 {
    %c0_i32 = arith.constant 0 : i32
    %c0_i32_0 = arith.constant 0 : i32
    return %c0_i32 : i32
  }
  func.func @transform_10(%arg0: i32) -> (i32, i32) {
    %c0_i32 = arith.constant 0 : i32
    %c0_i32_0 = arith.constant 0 : i32
    return %arg0, %c0_i32 : i32, i32
  }
}

</mosaic_0001>

<bundles_post_ra>
// kernel: tpu_custom_call.1
= control target key start
LH: loop header
LB: loop body
LE: loop exit
PB: predicated region body
PF: predicated region fallthrough
CT: control target
= control target key end

     0   :  { %15 = vsyncpa [#allocation3], 0  ;;  %s905_s0 = inlined_call_operand.hbm [shape: f32[8,128], index: 0, kind: input, shape index: {}]   ;;  %s906_s1 = inlined_call_operand.hbm [shape: f32[128,128], index: 1, kind: input, shape index: {}]   ;;  %s907_s2 = inlined_call_operand.vmem [shape: f32[1,128], index: 2, kind: input, shape index: {}]   ;;  %s908_s3 = inlined_call_operand.hbm [shape: f32[128,128], index: 3, kind: input, shape index: {}]   ;;  %s909_s4 = inlined_call_operand.vmem [shape: f32[1,128], index: 4, kind: input, shape index: {}]   ;;  %s910_s5 = inlined_call_operand.hbm [shape: f32[128,128], index: 5, kind: input, shape index: {}]   ;;  %s911_s6 = inlined_call_operand.vmem [shape: f32[1,128], index: 6, kind: input, shape index: {}]   ;;  %s912_s7 = inlined_call_operand.vmem [shape: f32[1,128], index: 7, kind: input, shape index: {}]   ;;  %s913_s8 = inlined_call_operand.vmem [shape: f32[1,128], index: 8, kind: input, shape index: {}]   ;;  %s914_s9 = inlined_call_operand.vmem [shape: f32[2], index: 9, kind: input, shape index: {}]   ;;  %s915_s10 = inlined_call_operand.hbm [shape: f32[8,8], index: 10, kind: output, shape index: {}]  }
   0x1   :  { %16 = vsyncpa [#allocation7], 0 }
   0x2   :  { %17 = vsyncpa [#allocation10], 0 }
   0x3   :  { %18 = vsyncpa [#allocation5], 0 }
   0x4   :  { %19 = vsyncpa [#allocation4], 0  ;;  %s740_s13 = smov [#allocation6]  }
   0x5   :  { %s35_s14 = sshll.u32 %s740_s13, 4  ;;  %s36_s14 = int_to_ptr.vmem [resolvable:$true] %s35_s14 }
   0x6   :  { %s626_s15 = scalar_lea.vmem %s36_s14, 2048  ;;  %p631_p1 = scmp.lt.s32.totalorder %s36_s14, %s36_s14 }
   0x7   :  { %p627_p0 = scmp.ne.s32.totalorder %s36_s14, %s626_s15  ;;  %p632_p2 = scmp.lt.s32.totalorder %s626_s15, %s626_s15 }
   0x9   :  { %p633_p3 = por %p632_p2, %p631_p1 }
   0xb   :  { %p634_p4 = pnand %p633_p3, %p627_p0 }
   0xd   :  { %637 = shalt.err (!%p634_p4)
}
   0xe   :  { %s741_s16 = smov 128   ;;  %s742_s17 = smov 8  }
   0xf   :  { %41 = dma.hbm_to_vmem [thread:$0]  %s906_s1, 2048, %s36_s14, [#allocation7], %s741_s16, %s741_s16, %s742_s17  }
  0x10   :  { %s743_s20 = smov [#allocation2]   ;;  %s744_s22 = smov [#allocation8]  }
  0x11   :  { %s26_s21 = sshll.u32 %s743_s20, 4  ;;  %s49_s23 = sshll.u32 %s744_s22, 4  ;;  %s27_s21 = int_to_ptr.vmem [resolvable:$true] %s26_s21  ;;  %s50_s23 = int_to_ptr.vmem [resolvable:$true] %s49_s23 }
  0x12   :  { %s646_s24 = scalar_lea.vmem %s27_s21, 128  ;;  %p651_p6 = scmp.lt.s32.totalorder %s27_s21, %s27_s21 }
  0x13   :  { %p647_p5 = scmp.ne.s32.totalorder %s27_s21, %s646_s24  ;;  %p652_p7 = scmp.lt.s32.totalorder %s646_s24, %s646_s24 }
  0x15   :  { %p653_p8 = por %p652_p7, %p651_p6 }
  0x17   :  { %p654_p9 = pnand %p653_p8, %p647_p5 }
  0x19   :  { %657 = shalt.err (!%p654_p9)
}
  0x1a   :  { %29 = dma.hbm_to_vmem [thread:$0]  %s905_s0, 128, %s27_s21, [#allocation3]  }
  0x1b   :  { %s666_s27 = scalar_lea.vmem %s50_s23, 2048  ;;  %p671_p11 = scmp.lt.s32.totalorder %s50_s23, %s50_s23 }
  0x1c   :  { %p667_p10 = scmp.ne.s32.totalorder %s50_s23, %s666_s27  ;;  %p672_p12 = scmp.lt.s32.totalorder %s666_s27, %s666_s27 }
  0x1e   :  { %p673_p13 = por %p672_p12, %p671_p11 }
  0x20   :  { %p674_p0 = pnand %p673_p13, %p667_p10 }
  0x22   :  { %677 = shalt.err (!%p674_p0)
}
  0x23   :  { %55 = dma.hbm_to_vmem [thread:$0]  %s908_s3, 2048, %s50_s23, [#allocation7], %s741_s16, %s741_s16, %s742_s17  }
  0x24   :  { %s745_s29 = smov [#allocation9]   ;;  %s82_s0 = sshll.u32 %s914_s9, 4  ;;  %s83_s0 = int_to_ptr.vmem [resolvable:$true] %s82_s0 }
  0x25   :  { %s63_s30 = sshll.u32 %s745_s29, 4  ;;  %s64_s30 = int_to_ptr.vmem [resolvable:$true] %s63_s30 }
  0x26   :  { %s686_s13 = scalar_lea.vmem %s64_s30, 2048  ;;  %p691_p2 = scmp.lt.s32.totalorder %s64_s30, %s64_s30 }
  0x27   :  { %p687_p1 = scmp.ne.s32.totalorder %s64_s30, %s686_s13  ;;  %p692_p3 = scmp.lt.s32.totalorder %s686_s13, %s686_s13 }
  0x29   :  { %p693_p4 = por %p692_p3, %p691_p2 }
  0x2b   :  { %p694_p5 = pnand %p693_p4, %p687_p1 }
  0x2d   :  { %697 = shalt.err (!%p694_p5)
}
  0x2e   :  { %69 = dma.hbm_to_vmem [thread:$0]  %s910_s5, 2048, %s64_s30, [#allocation10], %s741_s16, %s741_s16, %s742_s17  }
  0x2f   :  { %s698_s15 = scalar_lea.vmem %s83_s0, 16  ;;  %p703_p7 = scmp.lt.s32.totalorder %s83_s0, %s83_s0 }
  0x30   :  { %p699_p6 = scmp.ne.s32.totalorder %s83_s0, %s698_s15  ;;  %p704_p8 = scmp.lt.s32.totalorder %s698_s15, %s698_s15 }
  0x32   :  { %p705_p9 = por %p704_p8, %p703_p7 }
  0x34   :  { %p706_p10 = pnand %p705_p9, %p699_p6 }
  0x36   :  { %709 = shalt.err (!%p706_p10)
}
  0x37   :  { %s746_s9 = smov [#allocation11]  }
  0x38   :  { %85 = dma.vmem_to_smem %s83_s0, 16, %s746_s9, [#allocation5]  }
  0x39   :  { %730 = dma.done.wait [#allocation3], 128  }
  0x3a   :  { %731 = vsyncadd [#allocation3], 4294967168 }
  0x3b   :  { %732 = dma.done.wait [#allocation7], 4096  }
  0x3c   :  { %733 = vsyncadd [#allocation7], 4294963200 }
  0x3d   :  { %734 = dma.done.wait [#allocation10], 2048  }
  0x3e   :  { %735 = vsyncadd [#allocation10], 4294965248 }
  0x3f   :  { %736 = dma.done.wait [#allocation5], 16  }
  0x40   :  { %737 = vsyncadd [#allocation5], 4294967280 }
  0x41   :  { %101 = sfence }
  0x42   :  { %v118_v0 = vld [vmem:[#allocation6 + $0x78] sm:$0xff]  ;;  %v747_v1 = vmov 0.0   ;;  %v117_v2 = vld [vmem:[#allocation6 + $0x70] sm:$0xff]  ;;  %vm748_vm0 = vmmov 0   ;;  %v116_v3 = vld [vmem:[#allocation6 + $0x68] sm:$0xff]  ;;  %s411_s23 = sld [smem:[#allocation11]] }
  0x43   :  { %497 = vmatprep.subr.mxu0 %v747_v1  ;;  %529 = vmatprep.mubr.msk.f32.mxu0 %vm748_vm0, %v747_v1  ;;  %v115_v4 = vld [vmem:[#allocation6 + $0x60] sm:$0xff]  ;;  %v212_v5 = vld [vmem:[#allocation8 + $0x78] sm:$0xff]  ;;  %v211_v6 = vld [vmem:[#allocation8 + $0x70] sm:$0xff]  ;;  %vm420_vm3 = vcmask 64512  }
  0x44   :  { %498 = vmatpush3.msra.mxu0 %v118_v0  ;;  %532 = vmatprep.subr.mxu1 %v747_v1  ;;  %v114_v7 = vld [vmem:[#allocation6 + $0x58] sm:$0xff]  ;;  %v210_v8 = vld [vmem:[#allocation8 + $0x68] sm:$0xff]  ;;  %v113_v9 = vld [vmem:[#allocation6 + $0x50] sm:$0xff] }
  0x45   :  { %499 = vmatprep.subr.mxu0 %v747_v1  ;;  %564 = vmatprep.mubr.msk.f32.mxu1 %vm748_vm0, %v747_v1  ;;  %v209_v10 = vld [vmem:[#allocation8 + $0x60] sm:$0xff]  ;;  %v112_v11 = vld [vmem:[#allocation6 + $0x48] sm:$0xff]  ;;  %v208_v12 = vld [vmem:[#allocation8 + $0x58] sm:$0xff] }
  0x46   :  { %500 = vmatpush3.msra.mxu0 %v117_v2  ;;  %533 = vmatpush3.msra.mxu1 %v212_v5  ;;  %v111_v13 = vld [vmem:[#allocation6 + $0x40] sm:$0xff]  ;;  %v207_v14 = vld [vmem:[#allocation8 + $0x50] sm:$0xff]  ;;  %v110_v15 = vld [vmem:[#allocation6 + $0x38] sm:$0xff] }
  0x47   :  { %501 = vmatprep.subr.mxu0 %v747_v1  ;;  %534 = vmatprep.subr.mxu1 %v747_v1  ;;  %v206_v16 = vld [vmem:[#allocation8 + $0x48] sm:$0xff]  ;;  %v109_v17 = vld [vmem:[#allocation6 + $0x30] sm:$0xff]  ;;  %v107_v19 = vld [vmem:[#allocation6 + $0x20] sm:$0xff] }
  0x48   :  { %502 = vmatpush3.msra.mxu0 %v116_v3  ;;  %535 = vmatpush3.msra.mxu1 %v211_v6  ;;  %v108_v18 = vld [vmem:[#allocation6 + $0x28] sm:$0xff]  ;;  %v106_v20 = vld [vmem:[#allocation6 + $0x18] sm:$0xff]  ;;  %v105_v21 = vld [vmem:[#allocation6 + $0x10] sm:$0xff] }
  0x49   :  { %503 = vmatprep.subr.mxu0 %v747_v1  ;;  %536 = vmatprep.subr.mxu1 %v747_v1  ;;  %v104_v22 = vld [vmem:[#allocation6 + $0x8] sm:$0xff]  ;;  %v103_v23 = vld [vmem:[#allocation6] sm:$0xff]  ;;  %v856_v24 = vld [vmem:[#allocation2] sm:$0xff] }
  0x4a   :  { %504 = vmatpush3.msra.mxu0 %v115_v4  ;;  %537 = vmatpush3.msra.mxu1 %v210_v8  ;;  %v205_v25 = vld [vmem:[#allocation8 + $0x40] sm:$0xff]  ;;  %v204_v26 = vld [vmem:[#allocation8 + $0x38] sm:$0xff]  ;;  %v203_v27 = vld [vmem:[#allocation8 + $0x30] sm:$0xff] }
  0x4b   :  { %505 = vmatprep.subr.mxu0 %v747_v1  ;;  %538 = vmatprep.subr.mxu1 %v747_v1  ;;  %v202_v28 = vld [vmem:[#allocation8 + $0x28] sm:$0xff]  ;;  %v201_v29 = vld [vmem:[#allocation8 + $0x20] sm:$0xff]  ;;  %v200_v30 = vld [vmem:[#allocation8 + $0x18] sm:$0xff] }
  0x4c   :  { %506 = vmatpush3.msra.mxu0 %v114_v7  ;;  %539 = vmatpush3.msra.mxu1 %v209_v10  ;;  %v199_v31 = vld [vmem:[#allocation8 + $0x10] sm:$0xff]  ;;  %v198_v32 = vld [vmem:[#allocation8 + $0x8] sm:$0xff]  ;;  %v197_v33 = vld [vmem:[#allocation8] sm:$0xff]  ;;  %v414_v7 = vlaneseq }
  0x4d   :  { %507 = vmatprep.subr.mxu0 %v747_v1  ;;  %540 = vmatprep.subr.mxu1 %v747_v1  ;;  %v319_v34 = vld [vmem:[#allocation9 + $0x78] sm:$0xff]  ;;  %v318_v35 = vld [vmem:[#allocation9 + $0x70] sm:$0xff]  ;;  %v317_v36 = vld [vmem:[#allocation9 + $0x68] sm:$0xff] }
  0x4e   :  { %508 = vmatpush3.msra.mxu0 %v113_v9  ;;  %541 = vmatpush3.msra.mxu1 %v208_v12  ;;  %v316_v37 = vld [vmem:[#allocation9 + $0x60] sm:$0xff]  ;;  %v315_v38 = vld [vmem:[#allocation9 + $0x58] sm:$0xff]  ;;  %v314_v39 = vld [vmem:[#allocation9 + $0x50] sm:$0xff]  ;;  %v415_v9 = vand.u32 127, %v414_v7  ;;  %v412_v12 = vstv %s411_s23 }
  0x4f   :  { %509 = vmatprep.subr.mxu0 %v747_v1  ;;  %542 = vmatprep.subr.mxu1 %v747_v1  ;;  %v313_v40 = vld [vmem:[#allocation9 + $0x48] sm:$0xff]  ;;  %v440_v41 = vld [vmem:[%s907_s2] ss:$0 sm:$0xff]  ;;  %v312_v46 = vld [vmem:[#allocation9 + $0x40] sm:$0xff] }
  0x50   :  { %510 = vmatpush3.msra.mxu0 %v112_v11  ;;  %543 = vmatpush3.msra.mxu1 %v207_v14  ;;  %v311_v47 = vld [vmem:[#allocation9 + $0x38] sm:$0xff]  ;;  %v310_v48 = vld [vmem:[#allocation9 + $0x30] sm:$0xff]  ;;  %v309_v49 = vld [vmem:[#allocation9 + $0x28] sm:$0xff]  ;;  %vm417_vm1 = vcmp.eq.s32.totalorder %v415_v9, 1  ;;  %vm416_vm2 = vcmp.eq.s32.totalorder %v415_v9, 0 }
  0x51   :  { %511 = vmatprep.subr.mxu0 %v747_v1  ;;  %544 = vmatprep.subr.mxu1 %v747_v1  ;;  %v308_v50 = vld [vmem:[#allocation9 + $0x20] sm:$0xff]  ;;  %v307_v51 = vld [vmem:[#allocation9 + $0x18] sm:$0xff]  ;;  %v306_v52 = vld [vmem:[#allocation9 + $0x10] sm:$0xff] }
  0x52   :  { %512 = vmatpush3.msra.mxu0 %v111_v13  ;;  %545 = vmatpush3.msra.mxu1 %v206_v16  ;;  %v305_v53 = vld [vmem:[#allocation9 + $0x8] sm:$0xff]  ;;  %v304_v54 = vld [vmem:[#allocation9] sm:$0xff]  ;;  %v441_v55 = vld [vmem:[%s909_s4] ss:$0 sm:$0xff] }
  0x53   :  { %513 = vmatprep.subr.mxu0 %v747_v1  ;;  %546 = vmatprep.subr.mxu1 %v747_v1  ;;  %v444_v60 = vld [vmem:[%s911_s6] ss:$0 sm:$0xff]  ;;  %s443_s6 = sld [smem:[#allocation11 + $0x1]] }
  0x54   :  { %514 = vmatpush3.msra.mxu0 %v110_v15  ;;  %547 = vmatpush3.msra.mxu1 %v205_v25  ;;  %v445_v2 = vld [vmem:[%s913_s8] ss:$0 sm:$0xff]  ;;  %s749_s8 = smov [#allocation12]  }
  0x55   :  { %515 = vmatprep.subr.mxu0 %v747_v1  ;;  %548 = vmatprep.subr.mxu1 %v747_v1  ;;  %v442_v5 = vld [vmem:[%s912_s7] ss:$0 sm:$0xff]  ;;  %s428_s24 = sshll.u32 %s749_s8, 4  ;;  %s429_s24 = int_to_ptr.vmem [resolvable:$true] %s428_s24 }
  0x56   :  { %516 = vmatpush3.msra.mxu0 %v109_v17  ;;  %549 = vmatpush3.msra.mxu1 %v204_v26  ;;  %s710_s7 = scalar_lea.vmem %s429_s24, 128  ;;  %p715_p12 = scmp.lt.s32.totalorder %s429_s24, %s429_s24 }
  0x57   :  { %517 = vmatprep.subr.mxu0 %v747_v1  ;;  %550 = vmatprep.subr.mxu1 %v747_v1  ;;  %p711_p11 = scmp.ne.s32.totalorder %s429_s24, %s710_s7  ;;  %p716_p13 = scmp.lt.s32.totalorder %s710_s7, %s710_s7 }
  0x58   :  { %518 = vmatpush3.msra.mxu0 %v108_v18  ;;  %551 = vmatpush3.msra.mxu1 %v203_v27 }
  0x59   :  { %519 = vmatprep.subr.mxu0 %v747_v1  ;;  %552 = vmatprep.subr.mxu1 %v747_v1  ;;  %v302_v11 = vstv %s443_s6  ;;  %p717_p0 = por %p716_p13, %p715_p12 }
  0x5a   :  { %520 = vmatpush3.msra.mxu0 %v107_v19  ;;  %553 = vmatpush3.msra.mxu1 %v202_v28 }
  0x5b   :  { %521 = vmatprep.subr.mxu0 %v747_v1  ;;  %554 = vmatprep.subr.mxu1 %v747_v1  ;;  %p718_p1 = pnand %p717_p0, %p711_p11 }
  0x5c   :  { %522 = vmatpush3.msra.mxu0 %v106_v20  ;;  %555 = vmatpush3.msra.mxu1 %v201_v29 }
  0x5d   :  { %523 = vmatprep.subr.mxu0 %v747_v1  ;;  %556 = vmatprep.subr.mxu1 %v747_v1 }
  0x5e   :  { %524 = vmatpush3.msra.mxu0 %v105_v21  ;;  %557 = vmatpush3.msra.mxu1 %v200_v30 }
  0x5f   :  { %525 = vmatprep.subr.mxu0 %v747_v1  ;;  %558 = vmatprep.subr.mxu1 %v747_v1 }
  0x60   :  { %526 = vmatpush3.msra.mxu0 %v104_v22  ;;  %559 = vmatpush3.msra.mxu1 %v199_v31 }
  0x61   :  { %527 = vmatprep.subr.mxu0 %v747_v1  ;;  %560 = vmatprep.subr.mxu1 %v747_v1 }
  0x62   :  { %528 = vmatpush3.msra.mxu0 %v103_v23  ;;  %561 = vmatpush3.msra.mxu1 %v198_v32 }
  0x63   :  { %530 = vmatmul.mubr.f32.vlgmr.msra.gmra.mxu0 %v856_v24  ;;  %567 = vmatprep.subr.mxu0 %v747_v1 }
  0x64   :  { %599 = vmatprep.mubr.msk.f32.mxu0 %vm748_vm0, %v747_v1  ;;  %562 = vmatprep.subr.mxu1 %v747_v1 }
  0x65   :  { %563 = vmatpush3.msra.mxu1 %v197_v33  ;;  %568 = vmatpush3.msra.mxu0 %v319_v34 }
  0x66   :  { %569 = vmatprep.subr.mxu0 %v747_v1 }
  0x67   :  { %570 = vmatpush3.msra.mxu0 %v318_v35 }
  0x68   :  { %571 = vmatprep.subr.mxu0 %v747_v1 }
  0x69   :  { %572 = vmatpush3.msra.mxu0 %v317_v36 }
  0x6a   :  { %573 = vmatprep.subr.mxu0 %v747_v1 }
  0x6b   :  { %574 = vmatpush3.msra.mxu0 %v316_v37 }
  0x6c   :  { %575 = vmatprep.subr.mxu0 %v747_v1 }
  0x6d   :  { %576 = vmatpush3.msra.mxu0 %v315_v38 }
  0x6e   :  { %577 = vmatprep.subr.mxu0 %v747_v1 }
  0x6f   :  { %578 = vmatpush3.msra.mxu0 %v314_v39 }
  0x70   :  { %579 = vmatprep.subr.mxu0 %v747_v1 }
  0x71   :  { %580 = vmatpush3.msra.mxu0 %v313_v40 }
  0x72   :  { %581 = vmatprep.subr.mxu0 %v747_v1 }
  0x73   :  { %582 = vmatpush3.msra.mxu0 %v312_v46 }
  0x74   :  { %583 = vmatprep.subr.mxu0 %v747_v1 }
  0x75   :  { %584 = vmatpush3.msra.mxu0 %v311_v47 }
  0x76   :  { %585 = vmatprep.subr.mxu0 %v747_v1 }
  0x77   :  { %586 = vmatpush3.msra.mxu0 %v310_v48 }
  0x78   :  { %587 = vmatprep.subr.mxu0 %v747_v1 }
  0x79   :  { %588 = vmatpush3.msra.mxu0 %v309_v49 }
  0x7a   :  { %589 = vmatprep.subr.mxu0 %v747_v1 }
  0x7b   :  { %590 = vmatpush3.msra.mxu0 %v308_v50 }
  0x7c   :  { %591 = vmatprep.subr.mxu0 %v747_v1 }
  0x7d   :  { %592 = vmatpush3.msra.mxu0 %v307_v51 }
  0x7e   :  { %593 = vmatprep.subr.mxu0 %v747_v1 }
  0x7f   :  { %594 = vmatpush3.msra.mxu0 %v306_v52 }
  0x80   :  { %595 = vmatprep.subr.mxu0 %v747_v1 }
  0x81   :  { %596 = vmatpush3.msra.mxu0 %v305_v53 }
  0x82   :  { %597 = vmatprep.subr.mxu0 %v747_v1 }
  0x83   :  { %598 = vmatpush3.msra.mxu0 %v304_v54 }
 0x123   :  { %v192_v42 = vpop.f32.mrf.mxu0 }
 0x124   :  { %v193_v43 = vadd.f32 %v440_v41, %v192_v42 }
 0x125   :  { %v531_v44 = vpop.f32.mrf.mxu0 }
 0x126   :  { %612 = vtanh.f32 %v193_v43 }
 0x133   :  { %v613_v45 = vpop.eup %612 }
 0x134   :  { %565 = vmatmul.mubr.f32.vlgmr.msra.gmra.mxu1 %v613_v45 }
 0x1f4   :  { %v286_v56 = vpop.f32.mrf.mxu1 }
 0x1f5   :  { %v287_v57 = vadd.f32 %v441_v55, %v286_v56 }
 0x1f6   :  { %v566_v58 = vpop.f32.mrf.mxu1 }
 0x1f7   :  { %614 = vtanh.f32 %v287_v57 }
 0x204   :  { %v615_v59 = vpop.eup %614 }
 0x205   :  { %600 = vmatmul.mubr.f32.vlgmr.msra.gmra.mxu0 %v615_v59  ;;  %v298_v6 = vmul.f32 %v615_v59, %v442_v5 }
 0x2c5   :  { %v393_v61 = vpop.f32.mrf.mxu0 }
 0x2c6   :  { %v394_v62 = vadd.f32 %v444_v60, %v393_v61 }
 0x2c7   :  { %v601_v63 = vpop.f32.mrf.mxu0 }
 0x2c8   :  { %616 = vtanh.f32 %v394_v62 }
 0x2d5   :  { %v617_v0 = vpop.eup %616 }
 0x2d6   :  { %v398_v1 = vsub.f32 %v856_v24, %v617_v0 }
 0x2d8   :  { %v399_v3 = vmul.f32 %v398_v1, %v398_v1 }
 0x2da   :  { %v407_v4 = vmul.f32 %v445_v2, %v399_v3 }
 0x2dc   :  { %408 = vadd.xlane.f32.xlu0 %v407_v4 }
 0x2e0   :  { %299 = vadd.xlane.f32.xlu0 %v298_v6 }
 0x365   :  { %v409_v8 = vpop.xlane.xlu0 %408 }
 0x366   :  { %v410_v10 = vmul.f32 -0.5, %v409_v8 }
 0x368   :  { %v413_v15 = vadd.f32 %v412_v12, %v410_v10 }
 0x369   :  { %v300_v13 = vpop.xlane.xlu0 %299 }
 0x36a   :  { %v303_v14 = vadd.f32 %v302_v11, %v300_v13 }
 0x36c   :  { %v418_v16 = vsel %vm417_vm1, %v303_v14, 0.0 }
 0x36d   :  { %v419_v17 = vsel %vm416_vm2, %v413_v15, %v418_v16 }
 0x36e   :  { %421 = vst.msk [vmem:[#allocation12] sm:$0xff] %vm420_vm3, %v419_v17 }
 0x36f   :  { %721 = shalt.err (!%p718_p1)
}
 0x370   :  { %431 = dma.vmem_to_hbm [thread:$0]  %s429_s24, 128, %s915_s10, [#allocation4]  }
 0x371   :  { %738 = dma.done.wait [#allocation4], 128  }
 0x372   :  { %739 = vsyncadd [#allocation4], 4294967168 }
 0x373   :  { %435 = vsyncpa [#allocation3], 1 }
 0x374   :  { %436 = vsyncpa [#allocation7], 1 }
 0x375   :  { %437 = vsyncpa [#allocation10], 1 }
 0x376   :  { %438 = vsyncpa [#allocation4], 1 }
 0x377   :  { %439 = vsyncpa [#allocation5], 1 }

</bundles_post_ra>
